<compile_context>
chip_gen: v6e
topology: v6e:2x2x1
jax: 0.10.0
libtpu: 0.0.40
codegen_flags: <defaults>
</compile_context>

<pallas_src>
import jax
import jax.numpy as jnp
import numpy as np
from jax.experimental import pallas as pl
from jax.experimental.pallas import tpu as pltpu


MIN_MAX = (-2.0, 2.0)
MAX_NORM = 1.0          # nn.Embedding(..., max_norm=True) -> max_norm == 1.0
INIT_RANGE = 0.1        # module's init_weights(0.1)


def _round_up(n, m):
    return ((n + m - 1) // m) * m


def _make_kernel(num_embs, num_features, offset, tm, vocab_pad, e_pad):
    inv_f = 1.0 / num_features

    def kernel(x_ref, tbl_ref, o_ref):
        # ---- discretize: matches torch `(x - min // split).int().clamp(0, n-1)` ----
        x = x_ref[...]                                           # (tm, F) f32
        idx = jnp.clip((x - offset).astype(jnp.int32), 0, num_embs - 1)  # local ids

        # One 128-wide lane iota, hoisted out of the per-feature loop.
        lanes = jax.lax.broadcasted_iota(jnp.int32, (tm, vocab_pad), 1)

        # ---- gather + mean over features: per-feature one-hot matmuls ----
        # mean_f table[idx_f] == sum_f (inv_f * one_hot(idx_f, 128)) @ table[f]
        # One (tm, 128) one-hot is live at a time; MXU accumulates in f32.
        acc = jnp.zeros((tm, e_pad), jnp.float32)
        for f in range(num_features):                            # tiny static loop
            onehot = jnp.where(idx[:, f:f + 1] == lanes, inv_f, 0.0)
            onehot = onehot.astype(tbl_ref.dtype)                # 0 / inv_f exact
            acc = acc + jnp.dot(onehot, tbl_ref[f],
                                preferred_element_type=jnp.float32)
        o_ref[...] = acc.astype(o_ref.dtype)

    return kernel


def embedding_encoder_forward(x, table, *, num_embs=100, block_rows=512,
                              table_dtype=jnp.bfloat16):
    """x: (seq, batch, num_features) float.  table: (num_embs*num_features, em_size).

    Returns (seq, batch, em_size), matching EmbeddingEncoder.forward.
    Set table_dtype=jnp.float32 if the ~0.4% bf16 table error is unacceptable.
    """
    T, B, F = x.shape
    vocab, em_size = table.shape
    assert vocab == num_embs * F

    # Constants reproduced exactly as in the torch module (Python float floor-div).
    split_size = (MIN_MAX[1] - MIN_MAX[0]) / num_embs
    offset = MIN_MAX[0] // split_size                 # == -50.0 for defaults

    # ---- table preprocessing: done ONCE in the wrapper, not per grid step ----
    # max_norm=True renorm, reshape to (F, num_embs, E), zero-pad num_embs to a
    # multiple of 128 (sublane-aligned per-feature slices, K == 128 per MXU
    # pass) and em_size to a multiple of 128 (lane-dense output stores), then
    # cast once to the kernel table dtype (bf16 halves DMA + VMEM residency).
    tbl = table.astype(jnp.float32)
    nrm = jnp.sqrt(jnp.sum(tbl * tbl, axis=-1, keepdims=True))
    tbl = tbl * jnp.where(nrm > MAX_NORM, MAX_NORM / (nrm + 1e-7), 1.0)
    v_pad = _round_up(num_embs, 128)                  # 100 -> 128
    e_pad = _round_up(em_size, 128)                   # 32  -> 128
    tbl = tbl.reshape(F, num_embs, em_size)
    tbl = jnp.pad(tbl, ((0, 0), (0, v_pad - num_embs), (0, e_pad - em_size)))
    tbl = tbl.astype(table_dtype)

    # ---- row tiling ----
    M = T * B
    tm = min(_round_up(block_rows, 8), _round_up(M, 8))
    m_pad = _round_up(M, tm)
    x2 = x.reshape(M, F).astype(jnp.float32)
    if m_pad != M:
        # Padded rows produce in-range (clamped) indices and are sliced off below.
        x2 = jnp.pad(x2, ((0, m_pad - M), (0, 0)))

    kernel = _make_kernel(num_embs, F, offset, tm, v_pad, e_pad)

    # VMEM budget: table (worst case double-buffered) + pipelined x/out tiles
    # + headroom for in-kernel intermediates.  Clamped to sane per-core limits.
    tbl_bytes = F * v_pad * e_pad * jnp.dtype(table_dtype).itemsize
    tile_bytes = tm * F * 4 + tm * e_pad * 4
    vmem_limit = int(min(max(2 * tbl_bytes + 4 * tile_bytes + (4 << 20), 32 << 20),
                         128 << 20))

    def run(single_buffer_table):
        tbl_spec_kwargs = {}
        if single_buffer_table:
            # Constant index_map -> the table block never changes; one buffer is
            # enough.  Halves table VMEM residency (critical on v7x: 64 MiB/TC,
            # and each TensorCore holds its own copy under megacore sharding).
            tbl_spec_kwargs["pipeline_mode"] = pl.Buffered(1)
        return pl.pallas_call(
            kernel,
            out_shape=jax.ShapeDtypeStruct((m_pad, e_pad), jnp.float32),
            grid=(m_pad // tm,),
            in_specs=[
                pl.BlockSpec((tm, F), lambda i: (i, 0)),               # rows: pipelined
                pl.BlockSpec((F, v_pad, e_pad), lambda i: (0, 0, 0),   # table: resident
                             **tbl_spec_kwargs),
            ],
            out_specs=pl.BlockSpec((tm, e_pad), lambda i: (i, 0)),
            compiler_params=pltpu.CompilerParams(
                dimension_semantics=("parallel",),
                vmem_limit_bytes=vmem_limit),
        )(x2, tbl)

    try:
        out = run(True)
    except Exception:
        # Fallback for JAX versions without BlockSpec pipeline_mode support:
        # default (double-buffered) resident table — correctness is identical.
        out = run(False)

    return out[:M, :em_size].reshape(T, B, em_size)


def reference_forward(x, table, *, num_embs=100):
    """Pure-JAX reference replicating the torch forward (for a sanity check)."""
    T, B, F = x.shape
    split_size = (MIN_MAX[1] - MIN_MAX[0]) / num_embs
    offset = MIN_MAX[0] // split_size
    idx = jnp.clip((x - offset).astype(jnp.int32), 0, num_embs - 1)
    idx = idx + jnp.arange(F, dtype=jnp.int32)[None, None, :] * num_embs
    nrm = jnp.sqrt(jnp.sum(table * table, axis=-1, keepdims=True))
    tbl = table * jnp.where(nrm > MAX_NORM, MAX_NORM / (nrm + 1e-7), 1.0)
    return tbl[idx].mean(-2)


if __name__ == "__main__":
    key = jax.random.PRNGKey(0)
    kx, kt = jax.random.split(key)

    # Small shapes consistent with the module: x is (seq, batch, num_features).
    T, B, F, E, num_embs = 8, 2, 4, 32, 100
    x = jax.random.uniform(kx, (T, B, F), jnp.float32, -2.0, 2.0)
    table = jax.random.uniform(kt, (num_embs * F, E), jnp.float32,
                               -INIT_RANGE, INIT_RANGE)

    # block_rows=8 -> two grid steps at this toy size, exercising the pipeline.
    out = embedding_encoder_forward(x, table, num_embs=num_embs, block_rows=8)
    jax.block_until_ready(out)
    assert out.shape == (T, B, E)

    ref = reference_forward(x, table, num_embs=num_embs)
    # bf16 table in the matmul (f32 accumulation) -> small cast error vs f32 ref.
    np.testing.assert_allclose(np.asarray(out), np.asarray(ref),
                               rtol=2e-2, atol=3e-3)

    print("KERNEL_OK")
</pallas_src>

<mosaic_0001>
module attributes {stable_mosaic.version = 11 : i64} {
  func.func @kernel(%arg0: i32, %arg1: memref<8x4xf32, #tpu.memory_space<vmem>>, %arg2: memref<4x128x128xbf16, #tpu.memory_space<vmem>>, %arg3: memref<8x128xf32, #tpu.memory_space<vmem>>) attributes {dimension_semantics = [#tpu.dimension_semantics<parallel>], iteration_bounds = array<i64: 2>, scalar_prefetch = 0 : i64, scratch_operands = 0 : i64, tpu.core_type = #tpu.core_type<tc>, window_params = [{transform_indices = @transform_0, window_bounds = array<i64: 8, 4>}, {pipeline_mode = #tpu.pipeline_mode<synchronous>, transform_indices = @transform_1, window_bounds = array<i64: 4, 128, 128>}, {transform_indices = @transform_2, window_bounds = array<i64: 8, 128>}]} {
    %c0 = arith.constant 0 : index
    %c0_0 = arith.constant 0 : index
    %0 = vector.load %arg1[%c0, %c0_0] : memref<8x4xf32, #tpu.memory_space<vmem>>, vector<8x4xf32>
    %cst = arith.constant -5.000000e+01 : f32
    %1 = vector.broadcast %cst : f32 to vector<8x4xf32>
    %2 = arith.subf %0, %1 : vector<8x4xf32>
    %3 = arith.fptosi %2 : vector<8x4xf32> to vector<8x4xi32>
    %c0_i32 = arith.constant 0 : i32
    %c99_i32 = arith.constant 99 : i32
    %4 = vector.broadcast %c0_i32 : i32 to vector<8x4xi32>
    %5 = arith.maxsi %4, %3 : vector<8x4xi32>
    %6 = vector.broadcast %c99_i32 : i32 to vector<8x4xi32>
    %7 = arith.minsi %6, %5 : vector<8x4xi32>
    %8 = tpu.iota {dimensions = array<i32: 1>} : vector<8x128xi32>
    %cst_1 = arith.constant 0.000000e+00 : f32
    %9 = vector.broadcast %cst_1 : f32 to vector<8x128xf32>
    %10 = vector.extract_strided_slice %7 {offsets = [0, 0], sizes = [8, 1], strides = [1, 1]} : vector<8x4xi32> to vector<8x1xi32>
    %11 = vector.broadcast %10 : vector<8x1xi32> to vector<8x128xi32>
    %12 = arith.cmpi eq, %11, %8 : vector<8x128xi32>
    %cst_2 = arith.constant 2.500000e-01 : f32
    %cst_3 = arith.constant 0.000000e+00 : f32
    %13 = vector.broadcast %cst_2 : f32 to vector<8x128xf32>
    %14 = vector.broadcast %cst_3 : f32 to vector<8x128xf32>
    %15 = arith.select %12, %13, %14 : vector<8x128xi1>, vector<8x128xf32>
    %16 = arith.truncf %15 : vector<8x128xf32> to vector<8x128xbf16>
    %c0_4 = arith.constant 0 : index
    %c0_5 = arith.constant 0 : index
    %c0_6 = arith.constant 0 : index
    %17 = vector.load %arg2[%c0_4, %c0_5, %c0_6] : memref<4x128x128xbf16, #tpu.memory_space<vmem>>, vector<1x128x128xbf16>
    %18 = vector.shape_cast %17 : vector<1x128x128xbf16> to vector<128x128xbf16>
    %cst_7 = arith.constant dense<0.000000e+00> : vector<8x128xf32>
    %19 = tpu.matmul %16, %18, %cst_7 {dimension_numbers = #tpu.dot_dimension_numbers<[1], [0], [0], [1], [0, 0, 1, 1], [], []>} : vector<8x128xbf16>, vector<128x128xbf16>, vector<8x128xf32> -> vector<8x128xf32>
    %20 = arith.addf %9, %19 : vector<8x128xf32>
    %21 = vector.extract_strided_slice %7 {offsets = [0, 1], sizes = [8, 1], strides = [1, 1]} : vector<8x4xi32> to vector<8x1xi32>
    %22 = vector.broadcast %21 : vector<8x1xi32> to vector<8x128xi32>
    %23 = arith.cmpi eq, %22, %8 : vector<8x128xi32>
    %cst_8 = arith.constant 2.500000e-01 : f32
    %cst_9 = arith.constant 0.000000e+00 : f32
    %24 = vector.broadcast %cst_8 : f32 to vector<8x128xf32>
    %25 = vector.broadcast %cst_9 : f32 to vector<8x128xf32>
    %26 = arith.select %23, %24, %25 : vector<8x128xi1>, vector<8x128xf32>
    %27 = arith.truncf %26 : vector<8x128xf32> to vector<8x128xbf16>
    %c1 = arith.constant 1 : index
    %c0_10 = arith.constant 0 : index
    %c0_11 = arith.constant 0 : index
    %28 = vector.load %arg2[%c1, %c0_10, %c0_11] : memref<4x128x128xbf16, #tpu.memory_space<vmem>>, vector<1x128x128xbf16>
    %29 = vector.shape_cast %28 : vector<1x128x128xbf16> to vector<128x128xbf16>
    %cst_12 = arith.constant dense<0.000000e+00> : vector<8x128xf32>
    %30 = tpu.matmul %27, %29, %cst_12 {dimension_numbers = #tpu.dot_dimension_numbers<[1], [0], [0], [1], [0, 0, 1, 1], [], []>} : vector<8x128xbf16>, vector<128x128xbf16>, vector<8x128xf32> -> vector<8x128xf32>
    %31 = arith.addf %20, %30 : vector<8x128xf32>
    %32 = vector.extract_strided_slice %7 {offsets = [0, 2], sizes = [8, 1], strides = [1, 1]} : vector<8x4xi32> to vector<8x1xi32>
    %33 = vector.broadcast %32 : vector<8x1xi32> to vector<8x128xi32>
    %34 = arith.cmpi eq, %33, %8 : vector<8x128xi32>
    %cst_13 = arith.constant 2.500000e-01 : f32
    %cst_14 = arith.constant 0.000000e+00 : f32
    %35 = vector.broadcast %cst_13 : f32 to vector<8x128xf32>
    %36 = vector.broadcast %cst_14 : f32 to vector<8x128xf32>
    %37 = arith.select %34, %35, %36 : vector<8x128xi1>, vector<8x128xf32>
    %38 = arith.truncf %37 : vector<8x128xf32> to vector<8x128xbf16>
    %c2 = arith.constant 2 : index
    %c0_15 = arith.constant 0 : index
    %c0_16 = arith.constant 0 : index
    %39 = vector.load %arg2[%c2, %c0_15, %c0_16] : memref<4x128x128xbf16, #tpu.memory_space<vmem>>, vector<1x128x128xbf16>
    %40 = vector.shape_cast %39 : vector<1x128x128xbf16> to vector<128x128xbf16>
    %cst_17 = arith.constant dense<0.000000e+00> : vector<8x128xf32>
    %41 = tpu.matmul %38, %40, %cst_17 {dimension_numbers = #tpu.dot_dimension_numbers<[1], [0], [0], [1], [0, 0, 1, 1], [], []>} : vector<8x128xbf16>, vector<128x128xbf16>, vector<8x128xf32> -> vector<8x128xf32>
    %42 = arith.addf %31, %41 : vector<8x128xf32>
    %43 = vector.extract_strided_slice %7 {offsets = [0, 3], sizes = [8, 1], strides = [1, 1]} : vector<8x4xi32> to vector<8x1xi32>
    %44 = vector.broadcast %43 : vector<8x1xi32> to vector<8x128xi32>
    %45 = arith.cmpi eq, %44, %8 : vector<8x128xi32>
    %cst_18 = arith.constant 2.500000e-01 : f32
    %cst_19 = arith.constant 0.000000e+00 : f32
    %46 = vector.broadcast %cst_18 : f32 to vector<8x128xf32>
    %47 = vector.broadcast %cst_19 : f32 to vector<8x128xf32>
    %48 = arith.select %45, %46, %47 : vector<8x128xi1>, vector<8x128xf32>
    %49 = arith.truncf %48 : vector<8x128xf32> to vector<8x128xbf16>
    %c3 = arith.constant 3 : index
    %c0_20 = arith.constant 0 : index
    %c0_21 = arith.constant 0 : index
    %50 = vector.load %arg2[%c3, %c0_20, %c0_21] : memref<4x128x128xbf16, #tpu.memory_space<vmem>>, vector<1x128x128xbf16>
    %51 = vector.shape_cast %50 : vector<1x128x128xbf16> to vector<128x128xbf16>
    %cst_22 = arith.constant dense<0.000000e+00> : vector<8x128xf32>
    %52 = tpu.matmul %49, %51, %cst_22 {dimension_numbers = #tpu.dot_dimension_numbers<[1], [0], [0], [1], [0, 0, 1, 1], [], []>} : vector<8x128xbf16>, vector<128x128xbf16>, vector<8x128xf32> -> vector<8x128xf32>
    %53 = arith.addf %42, %52 : vector<8x128xf32>
    %c0_23 = arith.constant 0 : index
    %c0_24 = arith.constant 0 : index
    %54 = vector.load %arg3[%c0_23, %c0_24] : memref<8x128xf32, #tpu.memory_space<vmem>>, vector<8x128xf32>
    tpu.vector_store %arg3[%c0_23, %c0_24], %53 {strides = array<i32>} : memref<8x128xf32, #tpu.memory_space<vmem>>, vector<8x128xf32>,
    return
  }
  func.func @transform_0(%arg0: i32) -> (i32, i32) {
    %c0_i32 = arith.constant 0 : i32
    %c0_i32_0 = arith.constant 0 : i32
    return %arg0, %c0_i32 : i32, i32
  }
  func.func @transform_1(%arg0: i32) -> (i32, i32, i32) {
    %c0_i32 = arith.constant 0 : i32
    %c0_i32_0 = arith.constant 0 : i32
    %c0_i32_1 = arith.constant 0 : i32
    %c0_i32_2 = arith.constant 0 : i32
    return %c0_i32, %c0_i32_0, %c0_i32_1 : i32, i32, i32
  }
  func.func @transform_2(%arg0: i32) -> (i32, i32) {
    %c0_i32 = arith.constant 0 : i32
    %c0_i32_0 = arith.constant 0 : i32
    return %arg0, %c0_i32 : i32, i32
  }
}

module attributes {stable_mosaic.version = 11 : i64} {
  func.func @kernel(%arg0: i32, %arg1: memref<8x4xf32, #tpu.memory_space<vmem>>, %arg2: memref<4x128x128xbf16, #tpu.memory_space<vmem>>, %arg3: memref<8x128xf32, #tpu.memory_space<vmem>>) attributes {dimension_semantics = [#tpu.dimension_semantics<parallel>], iteration_bounds = array<i64: 2>, scalar_prefetch = 0 : i64, scratch_operands = 0 : i64, tpu.core_type = #tpu.core_type<tc>, window_params = [{transform_indices = @transform_0, window_bounds = array<i64: 8, 4>}, {pipeline_mode = #tpu.pipeline_mode<synchronous>, transform_indices = @transform_1, window_bounds = array<i64: 4, 128, 128>}, {transform_indices = @transform_2, window_bounds = array<i64: 8, 128>}]} {
    %c0 = arith.constant 0 : index
    %c0_0 = arith.constant 0 : index
    %0 = vector.load %arg1[%c0, %c0_0] : memref<8x4xf32, #tpu.memory_space<vmem>>, vector<8x4xf32>
    %cst = arith.constant -5.000000e+01 : f32
    %1 = vector.broadcast %cst : f32 to vector<8x4xf32>
    %2 = arith.subf %0, %1 : vector<8x4xf32>
    %3 = arith.fptosi %2 : vector<8x4xf32> to vector<8x4xi32>
    %c0_i32 = arith.constant 0 : i32
    %c99_i32 = arith.constant 99 : i32
    %4 = vector.broadcast %c0_i32 : i32 to vector<8x4xi32>
    %5 = arith.maxsi %4, %3 : vector<8x4xi32>
    %6 = vector.broadcast %c99_i32 : i32 to vector<8x4xi32>
    %7 = arith.minsi %6, %5 : vector<8x4xi32>
    %8 = tpu.iota {dimensions = array<i32: 1>} : vector<8x128xi32>
    %cst_1 = arith.constant 0.000000e+00 : f32
    %9 = vector.broadcast %cst_1 : f32 to vector<8x128xf32>
    %10 = vector.extract_strided_slice %7 {offsets = [0, 0], sizes = [8, 1], strides = [1, 1]} : vector<8x4xi32> to vector<8x1xi32>
    %11 = vector.broadcast %10 : vector<8x1xi32> to vector<8x128xi32>
    %12 = arith.cmpi eq, %11, %8 : vector<8x128xi32>
    %cst_2 = arith.constant 2.500000e-01 : f32
    %cst_3 = arith.constant 0.000000e+00 : f32
    %13 = vector.broadcast %cst_2 : f32 to vector<8x128xf32>
    %14 = vector.broadcast %cst_3 : f32 to vector<8x128xf32>
    %15 = arith.select %12, %13, %14 : vector<8x128xi1>, vector<8x128xf32>
    %16 = arith.truncf %15 : vector<8x128xf32> to vector<8x128xbf16>
    %c0_4 = arith.constant 0 : index
    %c0_5 = arith.constant 0 : index
    %c0_6 = arith.constant 0 : index
    %17 = vector.load %arg2[%c0_4, %c0_5, %c0_6] : memref<4x128x128xbf16, #tpu.memory_space<vmem>>, vector<1x128x128xbf16>
    %18 = vector.shape_cast %17 : vector<1x128x128xbf16> to vector<128x128xbf16>
    %cst_7 = arith.constant dense<0.000000e+00> : vector<8x128xf32>
    %19 = tpu.matmul %16, %18, %cst_7 {dimension_numbers = #tpu.dot_dimension_numbers<[1], [0], [0], [1], [0, 0, 1, 1], [], []>} : vector<8x128xbf16>, vector<128x128xbf16>, vector<8x128xf32> -> vector<8x128xf32>
    %20 = arith.addf %9, %19 : vector<8x128xf32>
    %21 = vector.extract_strided_slice %7 {offsets = [0, 1], sizes = [8, 1], strides = [1, 1]} : vector<8x4xi32> to vector<8x1xi32>
    %22 = vector.broadcast %21 : vector<8x1xi32> to vector<8x128xi32>
    %23 = arith.cmpi eq, %22, %8 : vector<8x128xi32>
    %cst_8 = arith.constant 2.500000e-01 : f32
    %cst_9 = arith.constant 0.000000e+00 : f32
    %24 = vector.broadcast %cst_8 : f32 to vector<8x128xf32>
    %25 = vector.broadcast %cst_9 : f32 to vector<8x128xf32>
    %26 = arith.select %23, %24, %25 : vector<8x128xi1>, vector<8x128xf32>
    %27 = arith.truncf %26 : vector<8x128xf32> to vector<8x128xbf16>
    %c1 = arith.constant 1 : index
    %c0_10 = arith.constant 0 : index
    %c0_11 = arith.constant 0 : index
    %28 = vector.load %arg2[%c1, %c0_10, %c0_11] : memref<4x128x128xbf16, #tpu.memory_space<vmem>>, vector<1x128x128xbf16>
    %29 = vector.shape_cast %28 : vector<1x128x128xbf16> to vector<128x128xbf16>
    %cst_12 = arith.constant dense<0.000000e+00> : vector<8x128xf32>
    %30 = tpu.matmul %27, %29, %cst_12 {dimension_numbers = #tpu.dot_dimension_numbers<[1], [0], [0], [1], [0, 0, 1, 1], [], []>} : vector<8x128xbf16>, vector<128x128xbf16>, vector<8x128xf32> -> vector<8x128xf32>
    %31 = arith.addf %20, %30 : vector<8x128xf32>
    %32 = vector.extract_strided_slice %7 {offsets = [0, 2], sizes = [8, 1], strides = [1, 1]} : vector<8x4xi32> to vector<8x1xi32>
    %33 = vector.broadcast %32 : vector<8x1xi32> to vector<8x128xi32>
    %34 = arith.cmpi eq, %33, %8 : vector<8x128xi32>
    %cst_13 = arith.constant 2.500000e-01 : f32
    %cst_14 = arith.constant 0.000000e+00 : f32
    %35 = vector.broadcast %cst_13 : f32 to vector<8x128xf32>
    %36 = vector.broadcast %cst_14 : f32 to vector<8x128xf32>
    %37 = arith.select %34, %35, %36 : vector<8x128xi1>, vector<8x128xf32>
    %38 = arith.truncf %37 : vector<8x128xf32> to vector<8x128xbf16>
    %c2 = arith.constant 2 : index
    %c0_15 = arith.constant 0 : index
    %c0_16 = arith.constant 0 : index
    %39 = vector.load %arg2[%c2, %c0_15, %c0_16] : memref<4x128x128xbf16, #tpu.memory_space<vmem>>, vector<1x128x128xbf16>
    %40 = vector.shape_cast %39 : vector<1x128x128xbf16> to vector<128x128xbf16>
    %cst_17 = arith.constant dense<0.000000e+00> : vector<8x128xf32>
    %41 = tpu.matmul %38, %40, %cst_17 {dimension_numbers = #tpu.dot_dimension_numbers<[1], [0], [0], [1], [0, 0, 1, 1], [], []>} : vector<8x128xbf16>, vector<128x128xbf16>, vector<8x128xf32> -> vector<8x128xf32>
    %42 = arith.addf %31, %41 : vector<8x128xf32>
    %43 = vector.extract_strided_slice %7 {offsets = [0, 3], sizes = [8, 1], strides = [1, 1]} : vector<8x4xi32> to vector<8x1xi32>
    %44 = vector.broadcast %43 : vector<8x1xi32> to vector<8x128xi32>
    %45 = arith.cmpi eq, %44, %8 : vector<8x128xi32>
    %cst_18 = arith.constant 2.500000e-01 : f32
    %cst_19 = arith.constant 0.000000e+00 : f32
    %46 = vector.broadcast %cst_18 : f32 to vector<8x128xf32>
    %47 = vector.broadcast %cst_19 : f32 to vector<8x128xf32>
    %48 = arith.select %45, %46, %47 : vector<8x128xi1>, vector<8x128xf32>
    %49 = arith.truncf %48 : vector<8x128xf32> to vector<8x128xbf16>
    %c3 = arith.constant 3 : index
    %c0_20 = arith.constant 0 : index
    %c0_21 = arith.constant 0 : index
    %50 = vector.load %arg2[%c3, %c0_20, %c0_21] : memref<4x128x128xbf16, #tpu.memory_space<vmem>>, vector<1x128x128xbf16>
    %51 = vector.shape_cast %50 : vector<1x128x128xbf16> to vector<128x128xbf16>
    %cst_22 = arith.constant dense<0.000000e+00> : vector<8x128xf32>
    %52 = tpu.matmul %49, %51, %cst_22 {dimension_numbers = #tpu.dot_dimension_numbers<[1], [0], [0], [1], [0, 0, 1, 1], [], []>} : vector<8x128xbf16>, vector<128x128xbf16>, vector<8x128xf32> -> vector<8x128xf32>
    %53 = arith.addf %42, %52 : vector<8x128xf32>
    %c0_23 = arith.constant 0 : index
    %c0_24 = arith.constant 0 : index
    %54 = vector.load %arg3[%c0_23, %c0_24] : memref<8x128xf32, #tpu.memory_space<vmem>>, vector<8x128xf32>
    tpu.vector_store %arg3[%c0_23, %c0_24], %53 {strides = array<i32>} : memref<8x128xf32, #tpu.memory_space<vmem>>, vector<8x128xf32>,
    return
  }
  func.func @transform_0(%arg0: i32) -> (i32, i32) {
    %c0_i32 = arith.constant 0 : i32
    %c0_i32_0 = arith.constant 0 : i32
    return %arg0, %c0_i32 : i32, i32
  }
  func.func @transform_1(%arg0: i32) -> (i32, i32, i32) {
    %c0_i32 = arith.constant 0 : i32
    %c0_i32_0 = arith.constant 0 : i32
    %c0_i32_1 = arith.constant 0 : i32
    %c0_i32_2 = arith.constant 0 : i32
    return %c0_i32, %c0_i32_0, %c0_i32_1 : i32, i32, i32
  }
  func.func @transform_2(%arg0: i32) -> (i32, i32) {
    %c0_i32 = arith.constant 0 : i32
    %c0_i32_0 = arith.constant 0 : i32
    return %arg0, %c0_i32 : i32, i32
  }
}

</mosaic_0001>

<bundles_post_ra>
// kernel: tpu_custom_call.1
= control target key start
LH: loop header
LB: loop body
LE: loop exit
PB: predicated region body
PF: predicated region fallthrough
CT: control target
= control target key end

     0   :  { %7 = vsyncpa [#allocation3], 0  ;;  %s1243_s0 = inlined_call_operand.vmem [shape: f32[16,4], index: 0, kind: input, shape index: {}]   ;;  %s1244_s1 = inlined_call_operand.hbm [shape: bf16[4,128,128], index: 1, kind: input, shape index: {}]   ;;  %s1245_s2 = inlined_call_operand.hbm [shape: f32[16,128], index: 2, kind: output, shape index: {}]  }
   0x1   :  { %8 = vsyncpa [#allocation4], 0 }
   0x2   :  { %10 = vsyncpa [#allocation4 + $0x1], 0  ;;  %s1080_s9 = smov 0   ;;  %s1082_s10 = smov 0  }
   0x3   :  { %s1084_s11 = smov 0   ;;  %s1086_s12 = smov 0  }
   0x4 LB: > { %s1101_s13 = sadd.s32 4294967295, %s1052_s12   ;;  %s695_s14 = sadd.s32 4294967294, %s1052_s12   ;;  %s1052_s12 = sphi %s1086_s12, %s1253_s12   ;;  %s1048_s11 = sphi %s1084_s11, %s1252_s11   ;;  %s1044_s10 = sphi %s1082_s10, %s1251_s10   ;;  %s1040_s9 = sphi %s1080_s9, %s1250_s9  }
   0x5   : > { %s1105_s15 = sadd.s32 1, %s1052_s12   ;;  %s70_s16 = sadd.s32 1, %s1048_s11 }
   0x6   : > { %s67_s17 = ssub.s32 %s1052_s12, %s1105_s15  ;;  %p80_p0 = scmp.ne.s32.totalorder %s1048_s11, %s1044_s10 }
   0x7   : > { %p68_p1 = scmp.eq.s32.totalorder %s67_s17, 0  ;;  %p81_p2 = scmp.eq.s32.totalorder %s1101_s13, 1 }
   0x8   : > { %p86_p3 = scmp.ne.s32.totalorder %s1044_s10, %s1040_s9  ;;  %p87_p4 = scmp.eq.s32.totalorder %s695_s14, 1 }
   0x9   : > { %s1116_s18 = scalar_select %p68_p1, %s1048_s11, %s70_s16  }
   0xa   : > { %p1118_p5 = por %p81_p2, %p80_p0  ;;  %p1122_p6 = por %p87_p4, %p86_p3 }
   0xb   : > { %p696_p7 = scmp.ge.s32.totalorder %s1052_s12, 1  ;;  %p94_p8 = scmp.lt.s32.totalorder %s1052_s12, 3 }
   0xc   : > { %s1247_s20 = scalar_select %p1122_p6, 1, 0 }
   0xd   : > { %p880_p9 = scmp.eq.s32.totalorder %s1101_s13, 0  ;;  %p1129_p10 = pnand %p696_p7, %p94_p8 }
   0xe   : > { %s1054_s22 = smov [#allocation2]  }
   0xf   : > { %s106_s23 = sshll.u32 %s1054_s22, 4  ;;  %p872_p11 = pneg %p1129_p10  ;;  %s107_s23 = int_to_ptr.vmem [resolvable:$true] %s106_s23 }
  0x10   : > { %s973_s24 = scalar_lea.vmem %s107_s23, 4096  ;;  %p981_p3 = scmp.lt.s32.totalorder %s107_s23, %s107_s23 }
  0x11   : > { %p873_p12 = pnand %p880_p9, %p872_p11  ;;  %p974_p0 = scmp.ne.s32.totalorder %s107_s23, %s973_s24 }
  0x12   : > { %p982_p4 = scmp.lt.s32.totalorder %s973_s24, %s973_s24 }
  0x13   : > { %p964_p13 = pneg %p873_p12 }
  0x14   : > { %p983_p6 = por %p982_p4, %p981_p3 }
  0x15   : > { %p976_p1 = pnand %p974_p0, %p964_p13 }
  0x17   : > { %p977_p2 = pneg %p976_p1 }
  0x19   : > { %p984_p7 = pnand %p983_p6, %p977_p2 }
  0x1b   : > { %987 = shalt.err (!%p984_p7)
}
  0x1c   : > { %s1055_s25 = smov 64   ;;  %s1056_s26 = smov 4  }
  0x1d   : > { %875 = dma.hbm_to_vmem [thread:$0]  (!%p873_p12), %s1244_s1, 4096, %s107_s23, [#allocation3], %s1055_s25, %s1055_s25, %s1056_s26  }
  0x1e   : > { %129 = sbr.rel (%p1129_p10) target bundleno = 427 (0x1ab), region = 28 }
  0x23   : > { %1031 = dma.done.wait (%p880_p9), [#allocation3], 4096  }
  0x24   : > { %1033 = vsyncadd (%p880_p9), [#allocation3], 4294963200  ;;  %p150_p8 = scmp.lt.s32.totalorder %s1101_s13, 1  ;;  %v1057_v0 = vmov 0   ;;  %v1058_v1 = vmov 2   ;;  %v1059_v2 = vmov 0.0   ;;  %v162_v27 = vlaneseq }
  0x25   : > { %925 = vset.pattern.permute.xlu0 %v1057_v0  ;;  %927 = vset.pattern.permute.xlu1 %v1058_v1  ;;  %v930_v5 = vld [vmem:[#allocation2 + $0x38] sm:$0xff]   ;;  %v931_v6 = vld [vmem:[#allocation2 + $0x30] sm:$0xff]   ;;  %v933_v12 = vld [vmem:[#allocation2 + $0x28] sm:$0xff]   ;;  %vm1060_vm2 = vmmov 0   ;;  %v1061_v17 = vmov 1   ;;  %v1062_v18 = vmov 3  }
  0x26   : > { %s151_s29 = scalar_select %p150_p8, %s1101_s13, 1  ;;  %804 = vmatprep.subr.bf16.mxu1 %v1059_v2  ;;  %784 = vmatprep.subr.bf16.mxu0 %v1059_v2  ;;  %v932_v8 = vld [vmem:[#allocation2 + $0x78] sm:$0xff]   ;;  %v934_v10 = vld [vmem:[#allocation2 + $0x70] sm:$0xff]   ;;  %v936_v13 = vld [vmem:[#allocation2 + $0x68] sm:$0xff]   ;;  %v1173_v28 = vand.u32 127, %v162_v27 }
  0x27   : > { %805 = vmatpush3.bf16.msra.mxu1 %v930_v5  ;;  %785 = vmatpush3.bf16.msra.mxu0 %v932_v8  ;;  %v935_v15 = vld [vmem:[#allocation2 + $0x20] sm:$0xff]   ;;  %v937_v19 = vld [vmem:[#allocation2 + $0x18] sm:$0xff]   ;;  %v939_v21 = vld [vmem:[#allocation2 + $0x10] sm:$0xff]   ;;  %v1063_v31 = vmov 0.25|0.25   ;;  %s147_s6 = sand.u32 1, %s1044_s10  }
  0x28   : > { %s702_s30 = sshll.u32 %s151_s29, 3  ;;  %806 = vmatprep.subr.bf16.mxu1 %v1059_v2  ;;  %786 = vmatprep.subr.bf16.mxu0 %v1059_v2  ;;  %v938_v16 = vld [vmem:[#allocation2 + $0x60] sm:$0xff]   ;;  %v940_v20 = vld [vmem:[#allocation2 + $0x58] sm:$0xff]   ;;  %v942_v22 = vld [vmem:[#allocation2 + $0x50] sm:$0xff]   ;;  %s701_s7 = sshll.u32 %s147_s6, 3 }
  0x29   : > { %s153_s5 = scalar_lea.vmem %s1243_s0, %s702_s30  ;;  %820 = vmatprep.mubr.msk.bf16.mxu1 %vm1060_vm2, %v1059_v2  ;;  %800 = vmatprep.mubr.msk.bf16.mxu0 %vm1060_vm2, %v1059_v2  ;;  %v941_v23 = vld [vmem:[#allocation2 + $0x8] sm:$0xff]   ;;  %v943_v25 = vld [vmem:[#allocation2] sm:$0xff]   ;;  %v945_v30 = vld [vmem:[#allocation2 + $0xf8] sm:$0xff]   ;;  %s745_s8 = sshll.u32 %s1101_s13, 7 }
  0x2a   : > { %v155_v3 = vld [vmem:[%s153_s5] sm:$0xff]  ;;  %v944_v24 = vld [vmem:[#allocation2 + $0x48] sm:$0xff]   ;;  %v947_v32 = vld [vmem:[#allocation2 + $0xf0] sm:$0xff]   ;;  %s149_s14 = scalar_lea.vmem [#allocation5], %s701_s7  ;;  %s1202_s22 = scalar_lea.hbm %s1245_s2, %s745_s8 }
  0x2b   : > { %v703_v4 = vadd.f32 50.0, %v155_v3  ;;  %807 = vmatpush3.bf16.msra.mxu1 %v931_v6  ;;  %787 = vmatpush3.bf16.msra.mxu0 %v934_v10  ;;  %v946_v26 = vld [vmem:[#allocation2 + $0x40] sm:$0xff]   ;;  %v948_v34 = vld [vmem:[#allocation2 + $0xb8] sm:$0xff]   ;;  %v949_v35 = vld [vmem:[#allocation2 + $0xe8] sm:$0xff]   ;;  %s624_s16 = sshll.u32 %s149_s14, 4  ;;  %s611_s13 = scalar_lea.sflag [#allocation4], %s147_s6  ;;  %s1204_s16 = int_to_ptr.vmem [resolvable:$true] %s624_s16 }
  0x2c   : > { %808 = vmatprep.subr.bf16.mxu1 %v1059_v2  ;;  %788 = vmatprep.subr.bf16.mxu0 %v1059_v2  ;;  %v950_v36 = vld [vmem:[#allocation2 + $0xb0] sm:$0xff]   ;;  %v951_v37 = vld [vmem:[#allocation2 + $0xe0] sm:$0xff]   ;;  %v952_v38 = vld [vmem:[#allocation2 + $0xa8] sm:$0xff]   ;;  %s988_s23 = scalar_lea.vmem %s1204_s16, 128  ;;  %s1064_s24 = smov [#allocation5]  }
  0x2d   : > { %v864_v7 = vtrunc.f32 %v703_v4  ;;  %v953_v39 = vld [vmem:[#allocation2 + $0xd8] sm:$0xff]   ;;  %v954_v40 = vld [vmem:[#allocation2 + $0xa0] sm:$0xff]   ;;  %v955_v41 = vld [vmem:[#allocation2 + $0xd0] sm:$0xff]   ;;  %p989_p6 = scmp.ne.s32.totalorder %s1204_s16, %s988_s23  ;;  %s992_s25 = sshll.u32 %s1064_s24, 4  ;;  %s993_s25 = int_to_ptr.vmem [resolvable:$false] %s992_s25 }
  0x2e   : > { %v956_v43 = vld [vmem:[#allocation2 + $0x98] sm:$0xff]   ;;  %v957_v44 = vld [vmem:[#allocation2 + $0xc8] sm:$0xff]   ;;  %v958_v45 = vld [vmem:[#allocation2 + $0x90] sm:$0xff]   ;;  %s994_s26 = scalar_lea.vmem %s993_s25, 256  ;;  %p995_p11 = scmp.lt.s32.totalorder %s1204_s16, %s993_s25 }
  0x2f   : > { %v865_v9 = vcvt.f32.s32 %v864_v7  ;;  %809 = vmatpush3.bf16.msra.mxu1 %v933_v12  ;;  %789 = vmatpush3.bf16.msra.mxu0 %v936_v13  ;;  %v959_v47 = vld [vmem:[#allocation2 + $0xc0] sm:$0xff]   ;;  %v960_v48 = vld [vmem:[#allocation2 + $0x88] sm:$0xff]   ;;  %p990_p9 = pnand %p989_p6, %p1118_p5  ;;  %p996_p12 = scmp.lt.s32.totalorder %s994_s26, %s988_s23 }
  0x30   : > { %810 = vmatprep.subr.bf16.mxu1 %v1059_v2  ;;  %790 = vmatprep.subr.bf16.mxu0 %v1059_v2  ;;  %v961_v49 = vld [vmem:[#allocation2 + $0x80] sm:$0xff]  }
  0x31   : > { %vm158_vm0 = vcmp.gt.s32.totalorder %v865_v9, 0  ;;  %p991_p10 = pneg %p990_p9  ;;  %p997_p13 = por %p996_p12, %p995_p11 }
  0x32   : > { %v159_v11 = vsel %vm158_vm0, %v865_v9, 0 }
  0x33   : > { %vm160_vm1 = vcmp.lt.s32.totalorder %v159_v11, 99  ;;  %811 = vmatpush3.bf16.msra.mxu1 %v935_v15  ;;  %791 = vmatpush3.bf16.msra.mxu0 %v938_v16  ;;  %p998_p0 = pnand %p997_p13, %p991_p10 }
  0x34   : > { %v161_v14 = vsel %vm160_vm1, %v159_v11, 99  ;;  %812 = vmatprep.subr.bf16.mxu1 %v1059_v2  ;;  %792 = vmatprep.subr.bf16.mxu0 %v1059_v2 }
  0x35   : > { %165 = vperm.xlu0 %925, %v161_v14   ;;  %386 = vperm.xlu1 %927, %v161_v14  }
  0x37   : > { %813 = vmatpush3.bf16.msra.mxu1 %v937_v19  ;;  %793 = vmatpush3.bf16.msra.mxu0 %v940_v20 }
  0x38   : > { %814 = vmatprep.subr.bf16.mxu1 %v1059_v2  ;;  %794 = vmatprep.subr.bf16.mxu0 %v1059_v2 }
  0x39   : > { %926 = vset.pattern.permute.xlu0 %v1061_v17  ;;  %928 = vset.pattern.permute.xlu1 %v1062_v18 }
  0x3a   : > { %187 = vperm.xlu0 %926, %v161_v14   ;;  %498 = vperm.xlu1 %928, %v161_v14  }
  0x3b   : > { %815 = vmatpush3.bf16.msra.mxu1 %v939_v21  ;;  %795 = vmatpush3.bf16.msra.mxu0 %v942_v22 }
  0x3c   : > { %816 = vmatprep.subr.bf16.mxu1 %v1059_v2  ;;  %796 = vmatprep.subr.bf16.mxu0 %v1059_v2 }
  0x3e   : > { %929 = vset.pattern.permute.xlu0 %v1062_v18 }
  0x3f   : > { %817 = vmatpush3.bf16.msra.mxu1 %v941_v23  ;;  %797 = vmatpush3.bf16.msra.mxu0 %v944_v24 }
  0x40   : > { %818 = vmatprep.subr.bf16.mxu1 %v1059_v2  ;;  %798 = vmatprep.subr.bf16.mxu0 %v1059_v2 }
  0x43   : > { %819 = vmatpush3.bf16.msra.mxu1 %v943_v25  ;;  %799 = vmatpush3.bf16.msra.mxu0 %v946_v26 }
  0x44   : > { %844 = vmatprep.subr.bf16.mxu1 %v1059_v2  ;;  %824 = vmatprep.subr.bf16.mxu0 %v1059_v2 }
  0xb0   : > { %v166_v29 = vpop.permute.xlu0 %165  ;;  %v387_v42 = vpop.permute.xlu1 %386 }
  0xb1   : > { %vm167_vm3 = vcmp.eq.s32.totalorder %v166_v29, %v1173_v28  ;;  %vm388_vm9 = vcmp.eq.s32.totalorder %v387_v42, %v1173_v28 }
  0xb2   : > { %vm722_vm4 = vmpackc.low %vm167_vm3, %vm167_vm3 }
  0xb3   : > { %821 = vmatmul.mubr.msk.bf16.vlgmr.msra.gmra.mxu1 %vm722_vm4, %v1063_v31  ;;  %vm732_vm10 = vmpackc.low %vm388_vm9, %vm388_vm9 }
  0xb4   : > { %845 = vmatpush3.bf16.msra.mxu1 %v945_v30  ;;  %860 = vmatprep.mubr.msk.bf16.mxu1 %vm1060_vm2, %v1059_v2 }
  0xb5   : > { %v188_v33 = vpop.permute.xlu0 %187  ;;  %846 = vmatprep.subr.bf16.mxu1 %v1059_v2  ;;  %v499_v46 = vpop.permute.xlu1 %498 }
  0xb6   : > { %vm189_vm5 = vcmp.eq.s32.totalorder %v188_v33, %v1173_v28  ;;  %vm500_vm7 = vcmp.eq.s32.totalorder %v499_v46, %v1173_v28 }
  0xb7   : > { %vm712_vm6 = vmpackc.low %vm189_vm5, %vm189_vm5 }
  0xb8   : > { %847 = vmatpush3.bf16.msra.mxu1 %v947_v32  ;;  %801 = vmatmul.mubr.msk.bf16.vlgmr.msra.gmra.mxu0 %vm712_vm6, %v1063_v31  ;;  %vm742_vm8 = vmpackc.low %vm500_vm7, %vm500_vm7 }
  0xb9   : > { %825 = vmatpush3.bf16.msra.mxu0 %v948_v34  ;;  %848 = vmatprep.subr.bf16.mxu1 %v1059_v2 }
  0xba   : > { %826 = vmatprep.subr.bf16.mxu0 %v1059_v2  ;;  %840 = vmatprep.mubr.msk.bf16.mxu0 %vm1060_vm2, %v1059_v2 }
  0xbc   : > { %849 = vmatpush3.bf16.msra.mxu1 %v949_v35 }
  0xbd   : > { %827 = vmatpush3.bf16.msra.mxu0 %v950_v36  ;;  %850 = vmatprep.subr.bf16.mxu1 %v1059_v2 }
  0xbe   : > { %828 = vmatprep.subr.bf16.mxu0 %v1059_v2 }
  0xc0   : > { %851 = vmatpush3.bf16.msra.mxu1 %v951_v37 }
  0xc1   : > { %829 = vmatpush3.bf16.msra.mxu0 %v952_v38  ;;  %852 = vmatprep.subr.bf16.mxu1 %v1059_v2 }
  0xc2   : > { %830 = vmatprep.subr.bf16.mxu0 %v1059_v2 }
  0xc4   : > { %853 = vmatpush3.bf16.msra.mxu1 %v953_v39 }
  0xc5   : > { %831 = vmatpush3.bf16.msra.mxu0 %v954_v40  ;;  %854 = vmatprep.subr.bf16.mxu1 %v1059_v2 }
  0xc6   : > { %832 = vmatprep.subr.bf16.mxu0 %v1059_v2 }
  0xc8   : > { %855 = vmatpush3.bf16.msra.mxu1 %v955_v41 }
  0xc9   : > { %833 = vmatpush3.bf16.msra.mxu0 %v956_v43  ;;  %856 = vmatprep.subr.bf16.mxu1 %v1059_v2 }
  0xca   : > { %834 = vmatprep.subr.bf16.mxu0 %v1059_v2 }
  0xcc   : > { %857 = vmatpush3.bf16.msra.mxu1 %v957_v44 }
  0xcd   : > { %835 = vmatpush3.bf16.msra.mxu0 %v958_v45  ;;  %858 = vmatprep.subr.bf16.mxu1 %v1059_v2 }
  0xce   : > { %836 = vmatprep.subr.bf16.mxu0 %v1059_v2 }
  0xd0   : > { %859 = vmatpush3.bf16.msra.mxu1 %v959_v47 }
  0xd1   : > { %837 = vmatpush3.bf16.msra.mxu0 %v960_v48 }
  0xd2   : > { %838 = vmatprep.subr.bf16.mxu0 %v1059_v2 }
  0xd3   : > { %861 = vmatmul.mubr.msk.bf16.vlgmr.msra.gmra.mxu1 %vm742_vm8, %v1063_v31 }
  0xd5   : > { %839 = vmatpush3.bf16.msra.mxu0 %v961_v49 }
  0xd8   : > { %841 = vmatmul.mubr.msk.bf16.vlgmr.msra.gmra.mxu0 %vm732_vm10, %v1063_v31 }
 0x173   : > { %v379_v50 = vpop.f32.mrf.mxu1 }
 0x175   : > { %v822_v51 = vpop.f32.mrf.mxu1 }
 0x177   : > { %v382_v52 = vpop.f32.mrf.mxu1 }
 0x178   : > { %v291_v53 = vpop.f32.mrf.mxu0 }
 0x179   : > { %v823_v54 = vpop.f32.mrf.mxu1  ;;  %v380_v60 = vadd.f32 %v379_v50, %v291_v53 }
 0x17a   : > { %v802_v55 = vpop.f32.mrf.mxu0 }
 0x17c   : > { %v294_v56 = vpop.f32.mrf.mxu0 }
 0x17e   : > { %v803_v57 = vpop.f32.mrf.mxu0 }
 0x193   : > { %v602_v58 = vpop.f32.mrf.mxu1 }
 0x195   : > { %v862_v59 = vpop.f32.mrf.mxu1 }
 0x197   : > { %v605_v61 = vpop.f32.mrf.mxu1 }
 0x198   : > { %v490_v62 = vpop.f32.mrf.mxu0 }
 0x199   : > { %v496_v63 = vadd.f32 %v490_v62, %v380_v60  ;;  %v863_v0 = vpop.f32.mrf.mxu1 }
 0x19a   : > { %v842_v1 = vpop.f32.mrf.mxu0 }
 0x19b   : > { %v608_v2 = vadd.f32 %v602_v58, %v496_v63 }
 0x19c   : > { %v493_v3 = vpop.f32.mrf.mxu0 }
 0x19d   : > { %609 = vst [vmem:[%s149_s14] sm:$0xff] %v608_v2 }
 0x19e   : > { %v843_v4 = vpop.f32.mrf.mxu0 }
 0x19f   : > { %1001 = shalt.err (!%p998_p0)
}
 0x1a0   : > { %s1002_s27 = scalar_lea.hbm %s1202_s22, 128  ;;  %s1006_s30 = scalar_lea.hbm %s1245_s2, 256 }
 0x1a1   : > { %p1003_p1 = scmp.ne.s32.totalorder %s1202_s22, %s1002_s27  ;;  %p1007_p4 = scmp.lt.s32.totalorder %s1202_s22, %s1245_s2 }
 0x1a2   : > { %p1008_p7 = scmp.lt.s32.totalorder %s1006_s30, %s1002_s27 }
 0x1a3   : > { %p1004_p2 = pnand %p1003_p1, %p1118_p5 }
 0x1a4   : > { %p1009_p8 = por %p1008_p7, %p1007_p4 }
 0x1a5   : > { %p1005_p3 = pneg %p1004_p2 }
 0x1a7   : > { %p1010_p6 = pnand %p1009_p8, %p1005_p3 }
 0x1a9   : > { %1013 = shalt.err (!%p1010_p6)
}
 0x1aa   : > { %870 = dma.vmem_to_hbm [thread:$0]  (%p1118_p5), %s1204_s16, 128, %s1202_s22, %s611_s13  }
 0x1ab PF: > { %p882_p9 = scmp.ge.s32.totalorder %s1052_s12, 2  ;;  %s636_s5 = sand.u32 1, %s1040_s9  }
 0x1ac   : > { %p1249_p10 = scmp.ne.s32.totalorder %s1247_s20, 0  ;;  %s637_s6 = scalar_lea.sflag [#allocation4], %s636_s5 }
 0x1ae   : > { %p877_p11 = pnand %p882_p9, %p1249_p10 }
 0x1b0   : > { %p878_p12 = pneg %p877_p11 }
 0x1b2   : > { %1035 = dma.done.wait (%p878_p12), %s637_s6, 128  }
 0x1b3   : > { %1037 = vsyncadd (%p878_p12), %s637_s6, 4294967168  ;;  %p13_p13 = scmp.ge.s32.totalorder %s1105_s15, 4   ;;  %s1250_s9 = smov %s1044_s10 }
 0x1b4   : > { %s1251_s10 = smov %s1048_s11  ;;  %s1252_s11 = smov %s1116_s18 }
 0x1b5   : > { %s1253_s12 = smov %s1105_s15  ;;  %15 = sbr.rel (!%p13_p13) target bundleno = 4 (0x4), region = 71 }
 0x1ba   :  { %642 = vsyncpa [#allocation3], 1 }
 0x1bb   :  { %644 = vsyncpa [#allocation3 + $0x1], 1 }
 0x1bc   :  { %645 = vsyncpa [#allocation4], 1 }
 0x1bd   :  { %647 = vsyncpa [#allocation4 + $0x1], 1 }

// kernel: tpu_custom_call.1
= control target key start
LH: loop header
LB: loop body
LE: loop exit
PB: predicated region body
PF: predicated region fallthrough
CT: control target
= control target key end

     0   :  { %7 = vsyncpa [#allocation3], 0  ;;  %s1243_s0 = inlined_call_operand.vmem [shape: f32[16,4], index: 0, kind: input, shape index: {}]   ;;  %s1244_s1 = inlined_call_operand.hbm [shape: bf16[4,128,128], index: 1, kind: input, shape index: {}]   ;;  %s1245_s2 = inlined_call_operand.hbm [shape: f32[16,128], index: 2, kind: output, shape index: {}]  }
   0x1   :  { %8 = vsyncpa [#allocation4], 0 }
   0x2   :  { %10 = vsyncpa [#allocation4 + $0x1], 0  ;;  %s1080_s9 = smov 0   ;;  %s1082_s10 = smov 0  }
   0x3   :  { %s1084_s11 = smov 0   ;;  %s1086_s12 = smov 0  }
   0x4 LB: > { %s1101_s13 = sadd.s32 4294967295, %s1052_s12   ;;  %s695_s14 = sadd.s32 4294967294, %s1052_s12   ;;  %s1052_s12 = sphi %s1086_s12, %s1253_s12   ;;  %s1048_s11 = sphi %s1084_s11, %s1252_s11   ;;  %s1044_s10 = sphi %s1082_s10, %s1251_s10   ;;  %s1040_s9 = sphi %s1080_s9, %s1250_s9  }
   0x5   : > { %s1105_s15 = sadd.s32 1, %s1052_s12   ;;  %s70_s16 = sadd.s32 1, %s1048_s11 }
   0x6   : > { %s67_s17 = ssub.s32 %s1052_s12, %s1105_s15  ;;  %p80_p0 = scmp.ne.s32.totalorder %s1048_s11, %s1044_s10 }
   0x7   : > { %p68_p1 = scmp.eq.s32.totalorder %s67_s17, 0  ;;  %p81_p2 = scmp.eq.s32.totalorder %s1101_s13, 1 }
   0x8   : > { %p86_p3 = scmp.ne.s32.totalorder %s1044_s10, %s1040_s9  ;;  %p87_p4 = scmp.eq.s32.totalorder %s695_s14, 1 }
   0x9   : > { %s1116_s18 = scalar_select %p68_p1, %s1048_s11, %s70_s16  }
   0xa   : > { %p1118_p5 = por %p81_p2, %p80_p0  ;;  %p1122_p6 = por %p87_p4, %p86_p3 }
   0xb   : > { %p696_p7 = scmp.ge.s32.totalorder %s1052_s12, 1  ;;  %p94_p8 = scmp.lt.s32.totalorder %s1052_s12, 3 }
   0xc   : > { %s1247_s20 = scalar_select %p1122_p6, 1, 0 }
   0xd   : > { %p880_p9 = scmp.eq.s32.totalorder %s1101_s13, 0  ;;  %p1129_p10 = pnand %p696_p7, %p94_p8 }
   0xe   : > { %s1054_s22 = smov [#allocation2]  }
   0xf   : > { %s106_s23 = sshll.u32 %s1054_s22, 4  ;;  %p872_p11 = pneg %p1129_p10  ;;  %s107_s23 = int_to_ptr.vmem [resolvable:$true] %s106_s23 }
  0x10   : > { %s973_s24 = scalar_lea.vmem %s107_s23, 4096  ;;  %p981_p3 = scmp.lt.s32.totalorder %s107_s23, %s107_s23 }
  0x11   : > { %p873_p12 = pnand %p880_p9, %p872_p11  ;;  %p974_p0 = scmp.ne.s32.totalorder %s107_s23, %s973_s24 }
  0x12   : > { %p982_p4 = scmp.lt.s32.totalorder %s973_s24, %s973_s24 }
  0x13   : > { %p964_p13 = pneg %p873_p12 }
  0x14   : > { %p983_p6 = por %p982_p4, %p981_p3 }
  0x15   : > { %p976_p1 = pnand %p974_p0, %p964_p13 }
  0x17   : > { %p977_p2 = pneg %p976_p1 }
  0x19   : > { %p984_p7 = pnand %p983_p6, %p977_p2 }
  0x1b   : > { %987 = shalt.err (!%p984_p7)
}
  0x1c   : > { %s1055_s25 = smov 64   ;;  %s1056_s26 = smov 4  }
  0x1d   : > { %875 = dma.hbm_to_vmem [thread:$0]  (!%p873_p12), %s1244_s1, 4096, %s107_s23, [#allocation3], %s1055_s25, %s1055_s25, %s1056_s26  }
  0x1e   : > { %129 = sbr.rel (%p1129_p10) target bundleno = 427 (0x1ab), region = 28 }
  0x23   : > { %1031 = dma.done.wait (%p880_p9), [#allocation3], 4096  }
  0x24   : > { %1033 = vsyncadd (%p880_p9), [#allocation3], 4294963200  ;;  %p150_p8 = scmp.lt.s32.totalorder %s1101_s13, 1  ;;  %v1057_v0 = vmov 0   ;;  %v1058_v1 = vmov 2   ;;  %v1059_v2 = vmov 0.0   ;;  %v162_v27 = vlaneseq }
  0x25   : > { %925 = vset.pattern.permute.xlu0 %v1057_v0  ;;  %927 = vset.pattern.permute.xlu1 %v1058_v1  ;;  %v930_v5 = vld [vmem:[#allocation2 + $0x38] sm:$0xff]   ;;  %v931_v6 = vld [vmem:[#allocation2 + $0x30] sm:$0xff]   ;;  %v933_v12 = vld [vmem:[#allocation2 + $0x28] sm:$0xff]   ;;  %vm1060_vm2 = vmmov 0   ;;  %v1061_v17 = vmov 1   ;;  %v1062_v18 = vmov 3  }
  0x26   : > { %s151_s29 = scalar_select %p150_p8, %s1101_s13, 1  ;;  %804 = vmatprep.subr.bf16.mxu1 %v1059_v2  ;;  %784 = vmatprep.subr.bf16.mxu0 %v1059_v2  ;;  %v932_v8 = vld [vmem:[#allocation2 + $0x78] sm:$0xff]   ;;  %v934_v10 = vld [vmem:[#allocation2 + $0x70] sm:$0xff]   ;;  %v936_v13 = vld [vmem:[#allocation2 + $0x68] sm:$0xff]   ;;  %v1173_v28 = vand.u32 127, %v162_v27 }
  0x27   : > { %805 = vmatpush3.bf16.msra.mxu1 %v930_v5  ;;  %785 = vmatpush3.bf16.msra.mxu0 %v932_v8  ;;  %v935_v15 = vld [vmem:[#allocation2 + $0x20] sm:$0xff]   ;;  %v937_v19 = vld [vmem:[#allocation2 + $0x18] sm:$0xff]   ;;  %v939_v21 = vld [vmem:[#allocation2 + $0x10] sm:$0xff]   ;;  %v1063_v31 = vmov 0.25|0.25   ;;  %s147_s6 = sand.u32 1, %s1044_s10  }
  0x28   : > { %s702_s30 = sshll.u32 %s151_s29, 3  ;;  %806 = vmatprep.subr.bf16.mxu1 %v1059_v2  ;;  %786 = vmatprep.subr.bf16.mxu0 %v1059_v2  ;;  %v938_v16 = vld [vmem:[#allocation2 + $0x60] sm:$0xff]   ;;  %v940_v20 = vld [vmem:[#allocation2 + $0x58] sm:$0xff]   ;;  %v942_v22 = vld [vmem:[#allocation2 + $0x50] sm:$0xff]   ;;  %s701_s7 = sshll.u32 %s147_s6, 3 }
  0x29   : > { %s153_s5 = scalar_lea.vmem %s1243_s0, %s702_s30  ;;  %820 = vmatprep.mubr.msk.bf16.mxu1 %vm1060_vm2, %v1059_v2  ;;  %800 = vmatprep.mubr.msk.bf16.mxu0 %vm1060_vm2, %v1059_v2  ;;  %v941_v23 = vld [vmem:[#allocation2 + $0x8] sm:$0xff]   ;;  %v943_v25 = vld [vmem:[#allocation2] sm:$0xff]   ;;  %v945_v30 = vld [vmem:[#allocation2 + $0xf8] sm:$0xff]   ;;  %s745_s8 = sshll.u32 %s1101_s13, 7 }
  0x2a   : > { %v155_v3 = vld [vmem:[%s153_s5] sm:$0xff]  ;;  %v944_v24 = vld [vmem:[#allocation2 + $0x48] sm:$0xff]   ;;  %v947_v32 = vld [vmem:[#allocation2 + $0xf0] sm:$0xff]   ;;  %s149_s14 = scalar_lea.vmem [#allocation5], %s701_s7  ;;  %s1202_s22 = scalar_lea.hbm %s1245_s2, %s745_s8 }
  0x2b   : > { %v703_v4 = vadd.f32 50.0, %v155_v3  ;;  %807 = vmatpush3.bf16.msra.mxu1 %v931_v6  ;;  %787 = vmatpush3.bf16.msra.mxu0 %v934_v10  ;;  %v946_v26 = vld [vmem:[#allocation2 + $0x40] sm:$0xff]   ;;  %v948_v34 = vld [vmem:[#allocation2 + $0xb8] sm:$0xff]   ;;  %v949_v35 = vld [vmem:[#allocation2 + $0xe8] sm:$0xff]   ;;  %s624_s16 = sshll.u32 %s149_s14, 4  ;;  %s611_s13 = scalar_lea.sflag [#allocation4], %s147_s6  ;;  %s1204_s16 = int_to_ptr.vmem [resolvable:$true] %s624_s16 }
  0x2c   : > { %808 = vmatprep.subr.bf16.mxu1 %v1059_v2  ;;  %788 = vmatprep.subr.bf16.mxu0 %v1059_v2  ;;  %v950_v36 = vld [vmem:[#allocation2 + $0xb0] sm:$0xff]   ;;  %v951_v37 = vld [vmem:[#allocation2 + $0xe0] sm:$0xff]   ;;  %v952_v38 = vld [vmem:[#allocation2 + $0xa8] sm:$0xff]   ;;  %s988_s23 = scalar_lea.vmem %s1204_s16, 128  ;;  %s1064_s24 = smov [#allocation5]  }
  0x2d   : > { %v864_v7 = vtrunc.f32 %v703_v4  ;;  %v953_v39 = vld [vmem:[#allocation2 + $0xd8] sm:$0xff]   ;;  %v954_v40 = vld [vmem:[#allocation2 + $0xa0] sm:$0xff]   ;;  %v955_v41 = vld [vmem:[#allocation2 + $0xd0] sm:$0xff]   ;;  %p989_p6 = scmp.ne.s32.totalorder %s1204_s16, %s988_s23  ;;  %s992_s25 = sshll.u32 %s1064_s24, 4  ;;  %s993_s25 = int_to_ptr.vmem [resolvable:$false] %s992_s25 }
  0x2e   : > { %v956_v43 = vld [vmem:[#allocation2 + $0x98] sm:$0xff]   ;;  %v957_v44 = vld [vmem:[#allocation2 + $0xc8] sm:$0xff]   ;;  %v958_v45 = vld [vmem:[#allocation2 + $0x90] sm:$0xff]   ;;  %s994_s26 = scalar_lea.vmem %s993_s25, 256  ;;  %p995_p11 = scmp.lt.s32.totalorder %s1204_s16, %s993_s25 }
  0x2f   : > { %v865_v9 = vcvt.f32.s32 %v864_v7  ;;  %809 = vmatpush3.bf16.msra.mxu1 %v933_v12  ;;  %789 = vmatpush3.bf16.msra.mxu0 %v936_v13  ;;  %v959_v47 = vld [vmem:[#allocation2 + $0xc0] sm:$0xff]   ;;  %v960_v48 = vld [vmem:[#allocation2 + $0x88] sm:$0xff]   ;;  %p990_p9 = pnand %p989_p6, %p1118_p5  ;;  %p996_p12 = scmp.lt.s32.totalorder %s994_s26, %s988_s23 }
  0x30   : > { %810 = vmatprep.subr.bf16.mxu1 %v1059_v2  ;;  %790 = vmatprep.subr.bf16.mxu0 %v1059_v2  ;;  %v961_v49 = vld [vmem:[#allocation2 + $0x80] sm:$0xff]  }
  0x31   : > { %vm158_vm0 = vcmp.gt.s32.totalorder %v865_v9, 0  ;;  %p991_p10 = pneg %p990_p9  ;;  %p997_p13 = por %p996_p12, %p995_p11 }
  0x32   : > { %v159_v11 = vsel %vm158_vm0, %v865_v9, 0 }
  0x33   : > { %vm160_vm1 = vcmp.lt.s32.totalorder %v159_v11, 99  ;;  %811 = vmatpush3.bf16.msra.mxu1 %v935_v15  ;;  %791 = vmatpush3.bf16.msra.mxu0 %v938_v16  ;;  %p998_p0 = pnand %p997_p13, %p991_p10 }
  0x34   : > { %v161_v14 = vsel %vm160_vm1, %v159_v11, 99  ;;  %812 = vmatprep.subr.bf16.mxu1 %v1059_v2  ;;  %792 = vmatprep.subr.bf16.mxu0 %v1059_v2 }
  0x35   : > { %165 = vperm.xlu0 %925, %v161_v14   ;;  %386 = vperm.xlu1 %927, %v161_v14  }
  0x37   : > { %813 = vmatpush3.bf16.msra.mxu1 %v937_v19  ;;  %793 = vmatpush3.bf16.msra.mxu0 %v940_v20 }
  0x38   : > { %814 = vmatprep.subr.bf16.mxu1 %v1059_v2  ;;  %794 = vmatprep.subr.bf16.mxu0 %v1059_v2 }
  0x39   : > { %926 = vset.pattern.permute.xlu0 %v1061_v17  ;;  %928 = vset.pattern.permute.xlu1 %v1062_v18 }
  0x3a   : > { %187 = vperm.xlu0 %926, %v161_v14   ;;  %498 = vperm.xlu1 %928, %v161_v14  }
  0x3b   : > { %815 = vmatpush3.bf16.msra.mxu1 %v939_v21  ;;  %795 = vmatpush3.bf16.msra.mxu0 %v942_v22 }
  0x3c   : > { %816 = vmatprep.subr.bf16.mxu1 %v1059_v2  ;;  %796 = vmatprep.subr.bf16.mxu0 %v1059_v2 }
  0x3e   : > { %929 = vset.pattern.permute.xlu0 %v1062_v18 }
  0x3f   : > { %817 = vmatpush3.bf16.msra.mxu1 %v941_v23  ;;  %797 = vmatpush3.bf16.msra.mxu0 %v944_v24 }
  0x40   : > { %818 = vmatprep.subr.bf16.mxu1 %v1059_v2  ;;  %798 = vmatprep.subr.bf16.mxu0 %v1059_v2 }
  0x43   : > { %819 = vmatpush3.bf16.msra.mxu1 %v943_v25  ;;  %799 = vmatpush3.bf16.msra.mxu0 %v946_v26 }
  0x44   : > { %844 = vmatprep.subr.bf16.mxu1 %v1059_v2  ;;  %824 = vmatprep.subr.bf16.mxu0 %v1059_v2 }
  0xb0   : > { %v166_v29 = vpop.permute.xlu0 %165  ;;  %v387_v42 = vpop.permute.xlu1 %386 }
  0xb1   : > { %vm167_vm3 = vcmp.eq.s32.totalorder %v166_v29, %v1173_v28  ;;  %vm388_vm9 = vcmp.eq.s32.totalorder %v387_v42, %v1173_v28 }
  0xb2   : > { %vm722_vm4 = vmpackc.low %vm167_vm3, %vm167_vm3 }
  0xb3   : > { %821 = vmatmul.mubr.msk.bf16.vlgmr.msra.gmra.mxu1 %vm722_vm4, %v1063_v31  ;;  %vm732_vm10 = vmpackc.low %vm388_vm9, %vm388_vm9 }
  0xb4   : > { %845 = vmatpush3.bf16.msra.mxu1 %v945_v30  ;;  %860 = vmatprep.mubr.msk.bf16.mxu1 %vm1060_vm2, %v1059_v2 }
  0xb5   : > { %v188_v33 = vpop.permute.xlu0 %187  ;;  %846 = vmatprep.subr.bf16.mxu1 %v1059_v2  ;;  %v499_v46 = vpop.permute.xlu1 %498 }
  0xb6   : > { %vm189_vm5 = vcmp.eq.s32.totalorder %v188_v33, %v1173_v28  ;;  %vm500_vm7 = vcmp.eq.s32.totalorder %v499_v46, %v1173_v28 }
  0xb7   : > { %vm712_vm6 = vmpackc.low %vm189_vm5, %vm189_vm5 }
  0xb8   : > { %847 = vmatpush3.bf16.msra.mxu1 %v947_v32  ;;  %801 = vmatmul.mubr.msk.bf16.vlgmr.msra.gmra.mxu0 %vm712_vm6, %v1063_v31  ;;  %vm742_vm8 = vmpackc.low %vm500_vm7, %vm500_vm7 }
  0xb9   : > { %825 = vmatpush3.bf16.msra.mxu0 %v948_v34  ;;  %848 = vmatprep.subr.bf16.mxu1 %v1059_v2 }
  0xba   : > { %826 = vmatprep.subr.bf16.mxu0 %v1059_v2  ;;  %840 = vmatprep.mubr.msk.bf16.mxu0 %vm1060_vm2, %v1059_v2 }
  0xbc   : > { %849 = vmatpush3.bf16.msra.mxu1 %v949_v35 }
  0xbd   : > { %827 = vmatpush3.bf16.msra.mxu0 %v950_v36  ;;  %850 = vmatprep.subr.bf16.mxu1 %v1059_v2 }
  0xbe   : > { %828 = vmatprep.subr.bf16.mxu0 %v1059_v2 }
  0xc0   : > { %851 = vmatpush3.bf16.msra.mxu1 %v951_v37 }
  0xc1   : > { %829 = vmatpush3.bf16.msra.mxu0 %v952_v38  ;;  %852 = vmatprep.subr.bf16.mxu1 %v1059_v2 }
  0xc2   : > { %830 = vmatprep.subr.bf16.mxu0 %v1059_v2 }
  0xc4   : > { %853 = vmatpush3.bf16.msra.mxu1 %v953_v39 }
  0xc5   : > { %831 = vmatpush3.bf16.msra.mxu0 %v954_v40  ;;  %854 = vmatprep.subr.bf16.mxu1 %v1059_v2 }
  0xc6   : > { %832 = vmatprep.subr.bf16.mxu0 %v1059_v2 }
  0xc8   : > { %855 = vmatpush3.bf16.msra.mxu1 %v955_v41 }
  0xc9   : > { %833 = vmatpush3.bf16.msra.mxu0 %v956_v43  ;;  %856 = vmatprep.subr.bf16.mxu1 %v1059_v2 }
  0xca   : > { %834 = vmatprep.subr.bf16.mxu0 %v1059_v2 }
  0xcc   : > { %857 = vmatpush3.bf16.msra.mxu1 %v957_v44 }
  0xcd   : > { %835 = vmatpush3.bf16.msra.mxu0 %v958_v45  ;;  %858 = vmatprep.subr.bf16.mxu1 %v1059_v2 }
  0xce   : > { %836 = vmatprep.subr.bf16.mxu0 %v1059_v2 }
  0xd0   : > { %859 = vmatpush3.bf16.msra.mxu1 %v959_v47 }
  0xd1   : > { %837 = vmatpush3.bf16.msra.mxu0 %v960_v48 }
  0xd2   : > { %838 = vmatprep.subr.bf16.mxu0 %v1059_v2 }
  0xd3   : > { %861 = vmatmul.mubr.msk.bf16.vlgmr.msra.gmra.mxu1 %vm742_vm8, %v1063_v31 }
  0xd5   : > { %839 = vmatpush3.bf16.msra.mxu0 %v961_v49 }
  0xd8   : > { %841 = vmatmul.mubr.msk.bf16.vlgmr.msra.gmra.mxu0 %vm732_vm10, %v1063_v31 }
 0x173   : > { %v379_v50 = vpop.f32.mrf.mxu1 }
 0x175   : > { %v822_v51 = vpop.f32.mrf.mxu1 }
 0x177   : > { %v382_v52 = vpop.f32.mrf.mxu1 }
 0x178   : > { %v291_v53 = vpop.f32.mrf.mxu0 }
 0x179   : > { %v823_v54 = vpop.f32.mrf.mxu1  ;;  %v380_v60 = vadd.f32 %v379_v50, %v291_v53 }
 0x17a   : > { %v802_v55 = vpop.f32.mrf.mxu0 }
 0x17c   : > { %v294_v56 = vpop.f32.mrf.mxu0 }
 0x17e   : > { %v803_v57 = vpop.f32.mrf.mxu0 }
 0x193   : > { %v602_v58 = vpop.f32.mrf.mxu1 }
 0x195   : > { %v862_v59 = vpop.f32.mrf.mxu1 }
 0x197   : > { %v605_v61 = vpop.f32.mrf.mxu1 }
 0x198   : > { %v490_v62 = vpop.f32.mrf.mxu0 }
 0x199   : > { %v496_v63 = vadd.f32 %v490_v62, %v380_v60  ;;  %v863_v0 = vpop.f32.mrf.mxu1 }
 0x19a   : > { %v842_v1 = vpop.f32.mrf.mxu0 }
 0x19b   : > { %v608_v2 = vadd.f32 %v602_v58, %v496_v63 }
 0x19c   : > { %v493_v3 = vpop.f32.mrf.mxu0 }
 0x19d   : > { %609 = vst [vmem:[%s149_s14] sm:$0xff] %v608_v2 }
 0x19e   : > { %v843_v4 = vpop.f32.mrf.mxu0 }
 0x19f   : > { %1001 = shalt.err (!%p998_p0)
}
 0x1a0   : > { %s1002_s27 = scalar_lea.hbm %s1202_s22, 128  ;;  %s1006_s30 = scalar_lea.hbm %s1245_s2, 256 }
 0x1a1   : > { %p1003_p1 = scmp.ne.s32.totalorder %s1202_s22, %s1002_s27  ;;  %p1007_p4 = scmp.lt.s32.totalorder %s1202_s22, %s1245_s2 }
 0x1a2   : > { %p1008_p7 = scmp.lt.s32.totalorder %s1006_s30, %s1002_s27 }
 0x1a3   : > { %p1004_p2 = pnand %p1003_p1, %p1118_p5 }
 0x1a4   : > { %p1009_p8 = por %p1008_p7, %p1007_p4 }
 0x1a5   : > { %p1005_p3 = pneg %p1004_p2 }
 0x1a7   : > { %p1010_p6 = pnand %p1009_p8, %p1005_p3 }
 0x1a9   : > { %1013 = shalt.err (!%p1010_p6)
}
 0x1aa   : > { %870 = dma.vmem_to_hbm [thread:$0]  (%p1118_p5), %s1204_s16, 128, %s1202_s22, %s611_s13  }
 0x1ab PF: > { %p882_p9 = scmp.ge.s32.totalorder %s1052_s12, 2  ;;  %s636_s5 = sand.u32 1, %s1040_s9  }
 0x1ac   : > { %p1249_p10 = scmp.ne.s32.totalorder %s1247_s20, 0  ;;  %s637_s6 = scalar_lea.sflag [#allocation4], %s636_s5 }
 0x1ae   : > { %p877_p11 = pnand %p882_p9, %p1249_p10 }
 0x1b0   : > { %p878_p12 = pneg %p877_p11 }
 0x1b2   : > { %1035 = dma.done.wait (%p878_p12), %s637_s6, 128  }
 0x1b3   : > { %1037 = vsyncadd (%p878_p12), %s637_s6, 4294967168  ;;  %p13_p13 = scmp.ge.s32.totalorder %s1105_s15, 4   ;;  %s1250_s9 = smov %s1044_s10 }
 0x1b4   : > { %s1251_s10 = smov %s1048_s11  ;;  %s1252_s11 = smov %s1116_s18 }
 0x1b5   : > { %s1253_s12 = smov %s1105_s15  ;;  %15 = sbr.rel (!%p13_p13) target bundleno = 4 (0x4), region = 71 }
 0x1ba   :  { %642 = vsyncpa [#allocation3], 1 }
 0x1bb   :  { %644 = vsyncpa [#allocation3 + $0x1], 1 }
 0x1bc   :  { %645 = vsyncpa [#allocation4], 1 }
 0x1bd   :  { %647 = vsyncpa [#allocation4 + $0x1], 1 }

</bundles_post_ra>
